<compile_context>
chip_gen: v5e
topology: v5e:2x2
jax: 0.10.0
libtpu: 0.0.40
codegen_flags: <defaults>
</compile_context>

<pallas_src>
import jax
import jax.numpy as jnp
from jax.experimental import pallas as pl
from jax.experimental.pallas import tpu as pltpu


def _policy_kernel(x_ref, w1_ref, b1_ref, w2_ref, b2_ref, w3_ref, b3_ref, out_ref):
    """Fused MLP policy in transposed (lane-dense) layout.

    x_ref : bf16 [D0, TB]     (batch on the lane axis)
    w*    : bf16 [out, in]    (PyTorch nn.Linear layout; 1/T pre-folded into w3/b3)
    b*    : f32  [out, 1]
    out   : f32  [A, TB]      softmax over actions (axis 0) == softmax(dim=1) in [B, A]
    """
    h = jnp.tanh(
        jnp.dot(w1_ref[...], x_ref[...], preferred_element_type=jnp.float32)
        + b1_ref[...]
    )
    h = jnp.tanh(
        jnp.dot(w2_ref[...], h.astype(jnp.bfloat16), preferred_element_type=jnp.float32)
        + b2_ref[...]
    )
    logits = (
        jnp.dot(w3_ref[...], h.astype(jnp.bfloat16), preferred_element_type=jnp.float32)
        + b3_ref[...]
    )

    # Numerically-stable softmax over the action (sublane) axis, per batch column.
    m = jnp.max(logits, axis=0, keepdims=True)
    e = jnp.exp(logits - m)
    inv_denom = pl.reciprocal(jnp.sum(e, axis=0, keepdims=True), approx=True)
    out_ref[...] = (e * inv_denom).astype(out_ref.dtype)


def nn_tree_policy_forward(x, prepped, *, block_b=1024):
    """x: [B, D0] float; prepped: output of prepare_params. Returns [B, A] f32 probs."""
    B, _ = x.shape
    w1, b1 = prepped["w1"], prepped["b1"]
    w2, b2 = prepped["w2"], prepped["b2"]
    w3, b3 = prepped["w3"], prepped["b3"]
    D0 = w1.shape[1]
    A = w3.shape[0]

    # Lane-dense layout: batch on the lane (last) axis. Pure layout plumbing,
    # fused by XLA with the f32->bf16 cast into a single copy.
    xt = x.T.astype(jnp.bfloat16)  # [D0, B]

    if B <= block_b:
        # Single block: skip grid/pipeline scaffolding entirely.
        vmem = pl.BlockSpec(memory_space=pltpu.MemorySpace.VMEM)
        out_t = pl.pallas_call(
            _policy_kernel,
            out_shape=jax.ShapeDtypeStruct((A, B), jnp.float32),
            in_specs=[vmem] * 7,
            out_specs=vmem,
        )(xt, w1, b1, w2, b2, w3, b3)
    else:
        tb = block_b  # lane-aligned tile (multiple of 128); partial last tile is masked
        col = lambda shape: pl.BlockSpec(shape, lambda i: (0, i))   # tiled over batch
        rep = lambda shape: pl.BlockSpec(shape, lambda i: (0, 0))   # VMEM-resident weights
        out_t = pl.pallas_call(
            _policy_kernel,
            out_shape=jax.ShapeDtypeStruct((A, B), jnp.float32),
            grid=(pl.cdiv(B, tb),),
            in_specs=[
                col((D0, tb)),
                rep(w1.shape), rep(b1.shape),
                rep(w2.shape), rep(b2.shape),
                rep(w3.shape), rep(b3.shape),
            ],
            out_specs=col((A, tb)),
            compiler_params=pltpu.CompilerParams(
                dimension_semantics=("parallel",)  # megacore sharding on v7x
            ),
        )(xt, w1, b1, w2, b2, w3, b3)

    return out_t.T  # back to [B, A]


def init_params(key, net_arch):
    """Deterministic synthetic init, PyTorch nn.Linear layout: W [out, in], b [out]."""
    params = {}
    ks = jax.random.split(key, 2 * (len(net_arch) - 1))
    for idx, (d_in, d_out) in enumerate(zip(net_arch[:-1], net_arch[1:])):
        bound = 1.0 / jnp.sqrt(d_in)
        params[f"w{idx + 1}"] = jax.random.uniform(
            ks[2 * idx], (d_out, d_in), minval=-bound, maxval=bound, dtype=jnp.float32)
        params[f"b{idx + 1}"] = jax.random.uniform(
            ks[2 * idx + 1], (d_out,), minval=-bound, maxval=bound, dtype=jnp.float32)
    return params


def prepare_params(params, temperature=1.0):
    """One-time prep: fold 1/T into the last layer, bf16 weights, column biases."""
    n_layers = len(params) // 2
    inv_t = 1.0 / float(temperature)
    prepped = {}
    for i in range(1, n_layers + 1):
        w = params[f"w{i}"]
        b = params[f"b{i}"]
        if i == n_layers:
            w = w * inv_t
            b = b * inv_t
        prepped[f"w{i}"] = w.astype(jnp.bfloat16)
        prepped[f"b{i}"] = b.reshape(-1, 1).astype(jnp.float32)
    return prepped


def reference_forward(x, params, temperature=1.0):
    """Pure-JAX reference of the PyTorch forward (mirrors the kernel's bf16 operands)."""
    q = lambda w: w.astype(jnp.bfloat16).astype(jnp.float32)
    h = x.astype(jnp.bfloat16).astype(jnp.float32)
    h = jnp.tanh(h @ q(params["w1"]).T + params["b1"])
    h = jnp.tanh(h @ q(params["w2"]).T + params["b2"])
    logits = (h @ q(params["w3"]).T + params["b3"]) / temperature
    return jax.nn.softmax(logits, axis=1)


if __name__ == "__main__":
    # net_arch = [16, 32, 32, 8]: input dim 16, two tanh hidden layers, 8 actions.
    net_arch = [16, 32, 32, 8]
    temperature = 1.5

    key = jax.random.PRNGKey(0)
    k_params, k_x1, k_x2 = jax.random.split(key, 3)
    params = init_params(k_params, net_arch)
    prepped = prepare_params(params, temperature)

    # Tiny batch: exercises the no-grid single-block fast path.
    x_small = jax.random.normal(k_x1, (4, net_arch[0]), dtype=jnp.float32)
    out_small = jax.block_until_ready(nn_tree_policy_forward(x_small, prepped))
    ref_small = reference_forward(x_small, params, temperature)
    assert out_small.shape == (4, net_arch[-1])
    assert jnp.allclose(jnp.sum(out_small, axis=1), 1.0, atol=5e-3)
    assert jnp.allclose(out_small, ref_small, atol=1e-2, rtol=1e-2)

    # Larger batch: exercises the batch-tiled, parallel, pipelined grid path
    # (including a partial last tile handled by masked stores).
    x_big = jax.random.normal(k_x2, (200, net_arch[0]), dtype=jnp.float32)
    out_big = jax.block_until_ready(
        nn_tree_policy_forward(x_big, prepped, block_b=128))
    ref_big = reference_forward(x_big, params, temperature)
    assert out_big.shape == (200, net_arch[-1])
    assert jnp.allclose(jnp.sum(out_big, axis=1), 1.0, atol=5e-3)
    assert jnp.allclose(out_big, ref_big, atol=1e-2, rtol=1e-2)

    print("KERNEL_OK")
</pallas_src>

<mosaic_0001>
module attributes {stable_mosaic.version = 11 : i64} {
  func.func @_policy_kernel(%arg0: memref<16x4xbf16, #tpu.memory_space<vmem>>, %arg1: memref<32x16xbf16, #tpu.memory_space<vmem>>, %arg2: memref<32x1xf32, #tpu.memory_space<vmem>>, %arg3: memref<32x32xbf16, #tpu.memory_space<vmem>>, %arg4: memref<32x1xf32, #tpu.memory_space<vmem>>, %arg5: memref<8x32xbf16, #tpu.memory_space<vmem>>, %arg6: memref<8x1xf32, #tpu.memory_space<vmem>>, %arg7: memref<8x4xf32, #tpu.memory_space<vmem>>) attributes {dimension_semantics = [], scalar_prefetch = 0 : i64, scratch_operands = 0 : i64, tpu.core_type = #tpu.core_type<tc>} {
    %c0 = arith.constant 0 : index
    %c0_0 = arith.constant 0 : index
    %0 = vector.load %arg1[%c0, %c0_0] : memref<32x16xbf16, #tpu.memory_space<vmem>>, vector<32x16xbf16>
    %c0_1 = arith.constant 0 : index
    %c0_2 = arith.constant 0 : index
    %1 = vector.load %arg0[%c0_1, %c0_2] : memref<16x4xbf16, #tpu.memory_space<vmem>>, vector<16x4xbf16>
    %cst = arith.constant dense<0.000000e+00> : vector<32x4xf32>
    %2 = tpu.matmul %0, %1, %cst {dimension_numbers = #tpu.dot_dimension_numbers<[1], [0], [0], [1], [0, 0, 1, 1], [], []>} : vector<32x16xbf16>, vector<16x4xbf16>, vector<32x4xf32> -> vector<32x4xf32>
    %c0_3 = arith.constant 0 : index
    %c0_4 = arith.constant 0 : index
    %3 = vector.load %arg2[%c0_3, %c0_4] : memref<32x1xf32, #tpu.memory_space<vmem>>, vector<32x1xf32>
    %4 = vector.broadcast %3 : vector<32x1xf32> to vector<32x4xf32>
    %5 = arith.addf %2, %4 : vector<32x4xf32>
    %6 = math.tanh %5 : vector<32x4xf32>
    %c0_5 = arith.constant 0 : index
    %c0_6 = arith.constant 0 : index
    %7 = vector.load %arg3[%c0_5, %c0_6] : memref<32x32xbf16, #tpu.memory_space<vmem>>, vector<32x32xbf16>
    %8 = arith.truncf %6 : vector<32x4xf32> to vector<32x4xbf16>
    %cst_7 = arith.constant dense<0.000000e+00> : vector<32x4xf32>
    %9 = tpu.matmul %7, %8, %cst_7 {dimension_numbers = #tpu.dot_dimension_numbers<[1], [0], [0], [1], [0, 0, 1, 1], [], []>} : vector<32x32xbf16>, vector<32x4xbf16>, vector<32x4xf32> -> vector<32x4xf32>
    %c0_8 = arith.constant 0 : index
    %c0_9 = arith.constant 0 : index
    %10 = vector.load %arg4[%c0_8, %c0_9] : memref<32x1xf32, #tpu.memory_space<vmem>>, vector<32x1xf32>
    %11 = vector.broadcast %10 : vector<32x1xf32> to vector<32x4xf32>
    %12 = arith.addf %9, %11 : vector<32x4xf32>
    %13 = math.tanh %12 : vector<32x4xf32>
    %c0_10 = arith.constant 0 : index
    %c0_11 = arith.constant 0 : index
    %14 = vector.load %arg5[%c0_10, %c0_11] : memref<8x32xbf16, #tpu.memory_space<vmem>>, vector<8x32xbf16>
    %15 = arith.truncf %13 : vector<32x4xf32> to vector<32x4xbf16>
    %cst_12 = arith.constant dense<0.000000e+00> : vector<8x4xf32>
    %16 = tpu.matmul %14, %15, %cst_12 {dimension_numbers = #tpu.dot_dimension_numbers<[1], [0], [0], [1], [0, 0, 1, 1], [], []>} : vector<8x32xbf16>, vector<32x4xbf16>, vector<8x4xf32> -> vector<8x4xf32>
    %c0_13 = arith.constant 0 : index
    %c0_14 = arith.constant 0 : index
    %17 = vector.load %arg6[%c0_13, %c0_14] : memref<8x1xf32, #tpu.memory_space<vmem>>, vector<8x1xf32>
    %18 = vector.broadcast %17 : vector<8x1xf32> to vector<8x4xf32>
    %19 = arith.addf %16, %18 : vector<8x4xf32>
    %cst_15 = arith.constant dense<0xFF800000> : vector<4xf32>
    %20 = vector.multi_reduction <maximumf>, %19, %cst_15 [0] : vector<8x4xf32> to vector<4xf32>
    %21 = vector.shape_cast %20 : vector<4xf32> to vector<1x4xf32>
    %22 = vector.broadcast %21 : vector<1x4xf32> to vector<8x4xf32>
    %23 = arith.subf %19, %22 : vector<8x4xf32>
    %24 = math.exp %23 : vector<8x4xf32>
    %cst_16 = arith.constant dense<0.000000e+00> : vector<4xf32>
    %25 = vector.multi_reduction <add>, %24, %cst_16 [0] : vector<8x4xf32> to vector<4xf32>
    %26 = vector.shape_cast %25 : vector<4xf32> to vector<1x4xf32>
    %27 = tpu.reciprocal %26 {approx = true} : vector<1x4xf32> -> vector<1x4xf32>
    %28 = vector.broadcast %27 : vector<1x4xf32> to vector<8x4xf32>
    %29 = arith.mulf %24, %28 : vector<8x4xf32>
    %c0_17 = arith.constant 0 : index
    %c0_18 = arith.constant 0 : index
    %30 = vector.load %arg7[%c0_17, %c0_18] : memref<8x4xf32, #tpu.memory_space<vmem>>, vector<8x4xf32>
    tpu.vector_store %arg7[%c0_17, %c0_18], %29 {strides = array<i32>} : memref<8x4xf32, #tpu.memory_space<vmem>>, vector<8x4xf32>,
    return
  }
}

</mosaic_0001>

<bundles_post_ra>
// kernel: tpu_custom_call.1
= control target key start
LH: loop header
LB: loop body
LE: loop exit
PB: predicated region body
PF: predicated region fallthrough
CT: control target
= control target key end

     0   :  { %v279_v1 = vmov 0   ;;  %vm73_vm0 = vcmask 130048   ;;  %vm143_vm1 = vcmask 261120   ;;  %vm198_vm2 = vcmask 31744   ;;  %s374_s0 = inlined_call_operand.vmem [shape: bf16[16,4], index: 0, kind: input, shape index: {}]   ;;  %s375_s1 = inlined_call_operand.vmem [shape: bf16[32,16], index: 1, kind: input, shape index: {}]   ;;  %s376_s2 = inlined_call_operand.vmem [shape: f32[32,1], index: 2, kind: input, shape index: {}]   ;;  %s377_s4 = inlined_call_operand.vmem [shape: f32[32,1], index: 4, kind: input, shape index: {}]   ;;  %s378_s6 = inlined_call_operand.vmem [shape: f32[8,1], index: 6, kind: input, shape index: {}]   ;;  %s379_s3 = inlined_call_operand.vmem [shape: bf16[32,32], index: 3, kind: input, shape index: {}]   ;;  %s380_s5 = inlined_call_operand.vmem [shape: bf16[8,32], index: 5, kind: input, shape index: {}]   ;;  %s381_s7 = inlined_call_operand.vmem [shape: f32[8,4], index: 7, kind: output, shape index: {}]  }
   0x1   :  { %v250_v0 = vld [vmem:[%s374_s0] sm:$0xff]  ;;  %257 = vset.pattern.permute.xlu1 %v279_v1  ;;  %256 = vset.pattern.permute.xlu0 %v279_v1  ;;  %v35_v2 = vld [vmem:[%s376_s2 + $0x10] sm:$0xff]  ;;  %v36_v5 = vld [vmem:[%s376_s2 + $0x18] sm:$0xff] }
   0x2   :  { %v248_v3 = vld [vmem:[%s375_s1] sm:$0xff]  ;;  %49 = vperm.xlu0 %256, %v35_v2   ;;  %258 = vset.pattern.permute.xlu2 %v279_v1  ;;  %v34_v6 = vld [vmem:[%s376_s2 + $0x8] sm:$0xff]  ;;  %v111_v12 = vld [vmem:[%s377_s4 + $0x10] sm:$0xff] }
   0x3   :  { %v33_v4 = vld [vmem:[%s376_s2] sm:$0xff]  ;;  %87 = vmatpush.bf16.msra.mxu0 %v250_v0  ;;  %v110_v8 = vld [vmem:[%s377_s4 + $0x8] sm:$0xff]  ;;  %125 = vperm.xlu2 %258, %v111_v12   ;;  %v112_v16 = vld [vmem:[%s377_s4 + $0x18] sm:$0xff] }
   0x4   :  { %39 = vperm.xlu1 %257, %v33_v4   ;;  %v109_v7 = vld [vmem:[%s377_s4] sm:$0xff]  ;;  %v249_v9 = vld [vmem:[%s375_s1 + $0x8] sm:$0xff] }
   0x5   :  { %v176_v23 = vld [vmem:[%s378_s6] sm:$0xff]  ;;  %v252_v32 = vld [vmem:[%s379_s3 + $0x8] sm:$0xff] }
   0x6   :  { %235 = vmatmul.msk.bf16.vlgmr.msra.gmra.mxu0 %vm73_vm0, %v248_v3  ;;  %v251_v31 = vld [vmem:[%s379_s3] sm:$0xff] }
   0x7   :  { %v173_v51 = vld [vmem:[%s380_s5] sm:$0xf] }
   0xa   :  { %54 = vperm.xlu0 %256, %v36_v5  }
   0xb   :  { %130 = vperm.xlu2 %258, %v112_v16  }
   0xc   :  { %44 = vperm.xlu1 %257, %v34_v6  }
  0x12   :  { %115 = vperm.xlu0 %256, %v109_v7  }
  0x13   :  { %179 = vperm.xlu2 %258, %v176_v23  }
  0x14   :  { %120 = vperm.xlu1 %257, %v110_v8  }
  0x16   :  { %236 = vmatmul.msk.bf16.gmra.mxu0 %vm73_vm0, %v249_v9 }
  0x5d   :  { %v126_v34 = vpop.permute.xlu2 %125 }
  0x65   :  { %v131_v39 = vpop.permute.xlu2 %130 }
  0x6d   :  { %v180_v52 = vpop.permute.xlu2 %179 }
  0x74   :  { %v50_v14 = vpop.permute.xlu0 %49 }
  0x76   :  { %v40_v13 = vpop.permute.xlu1 %39 }
  0x7c   :  { %v55_v19 = vpop.permute.xlu0 %54 }
  0x7e   :  { %v45_v17 = vpop.permute.xlu1 %44 }
  0x83   :  { %v89_v10 = vpop.f32.mrf.mxu0 }
  0x84   :  { %v90_v24 = vadd.f32 %v89_v10, %v40_v13  ;;  %v116_v43 = vpop.permute.xlu0 %115 }
  0x86   :  { %v121_v38 = vpop.permute.xlu1 %120 }
  0x8b   :  { %v91_v11 = vpop.f32.mrf.mxu0 }
  0x8c   :  { %v92_v21 = vadd.f32 %v91_v11, %v45_v17 }
  0x93   :  { %v94_v15 = vpop.f32.mrf.mxu0 }
  0x94   :  { %v95_v18 = vadd.f32 %v94_v15, %v50_v14 }
  0x96   :  { %259 = vtanh.f32 %v95_v18 }
  0x9b   :  { %v96_v20 = vpop.f32.mrf.mxu0 }
  0x9c   :  { %v97_v22 = vadd.f32 %v96_v20, %v55_v19  ;;  %v260_v25 = vpop.eup %259 }
  0x9e   :  { %261 = vtanh.f32 %v97_v22 }
  0x9f   :  { %263 = vtanh.f32 %v92_v21 }
  0xa0   :  { %265 = vtanh.f32 %v90_v24 }
  0xa4   :  { %v262_v26 = vpop.eup %261 }
  0xa5   :  { %v108_v27 = vpack.c.bf16 %v262_v26, %v260_v25  ;;  %v264_v28 = vpop.eup %263 }
  0xa6   :  { %v266_v29 = vpop.eup %265 }
  0xa7   :  { %156 = vmatpush.bf16.msra.mxu1 %v108_v27  ;;  %253 = vmatpush.bf16.msra.mxu3 %v108_v27  ;;  %v107_v30 = vpack.c.bf16 %v264_v28, %v266_v29 }
  0xab   :  { %157 = vmatpush.bf16.msra.mxu1 %v107_v30  ;;  %254 = vmatpush.bf16.msra.mxu3 %v107_v30 }
  0xae   :  { %245 = vmatmul.msk.bf16.vlgmr.msra.gmra.mxu1 %vm143_vm1, %v251_v31  ;;  %246 = vmatmul.msk.bf16.vlgmr.msra.gmra.mxu3 %vm143_vm1, %v252_v32 }
 0x12b   :  { %v159_v33 = vpop.f32.mrf.mxu1 }
 0x12c   :  { %v160_v44 = vadd.f32 %v159_v33, %v116_v43 }
 0x131   :  { %v164_v35 = vpop.f32.mrf.mxu3 }
 0x132   :  { %v165_v36 = vadd.f32 %v164_v35, %v126_v34 }
 0x133   :  { %v161_v37 = vpop.f32.mrf.mxu1 }
 0x134   :  { %v162_v41 = vadd.f32 %v161_v37, %v121_v38  ;;  %267 = vtanh.f32 %v165_v36 }
 0x139   :  { %v166_v40 = vpop.f32.mrf.mxu3 }
 0x13a   :  { %v167_v42 = vadd.f32 %v166_v40, %v131_v39  ;;  %v268_v45 = vpop.eup %267 }
 0x13c   :  { %269 = vtanh.f32 %v167_v42 }
 0x13d   :  { %271 = vtanh.f32 %v162_v41 }
 0x13e   :  { %273 = vtanh.f32 %v160_v44 }
 0x142   :  { %v270_v46 = vpop.eup %269 }
 0x143   :  { %v175_v47 = vpack.c.bf16 %v270_v46, %v268_v45  ;;  %v272_v48 = vpop.eup %271 }
 0x144   :  { %v274_v49 = vpop.eup %273 }
 0x145   :  { %191 = vmatpush.bf16.msra.mxu2 %v175_v47  ;;  %v174_v50 = vpack.c.bf16 %v272_v48, %v274_v49 }
 0x149   :  { %192 = vmatpush.bf16.msra.mxu2 %v174_v50 }
 0x14c   :  { %247 = vmatmul.msk.bf16.vlgmr.msra.gmra.mxu2 %vm143_vm1, %v173_v51 }
 0x1cf   :  { %v194_v53 = vpop.f32.mrf.mxu2 }
 0x1d0   :  { %v195_v54 = vadd.f32 %v194_v53, %v180_v52 }
 0x1d2   :  { %v199_v55 = vsel %vm198_vm2, %v195_v54, -inf }
 0x1d3   :  { %v200_v56 = vrot.slane %v199_v55, 4 }
 0x1d5   :  { %v201_v57 = vmax.f32 %v199_v55, %v200_v56 }
 0x1d7   :  { %v202_v58 = vrot.slane %v201_v57, 2  ;;  %v196_v59 = vpop.f32.mrf.mxu2 }
 0x1d9   :  { %v203_v60 = vmax.f32 %v201_v57, %v202_v58 }
 0x1db   :  { %v204_v61 = vrot.slane %v203_v60, 1 }
 0x1dd   :  { %v205_v62 = vmax.f32 %v203_v60, %v204_v61 }
 0x1df   :  { %v206_v63 = vsub.f32 %v195_v54, %v205_v62 }
 0x1e1   :  { %v207_v0 = vmul.f32 1.442695, %v206_v63 }
 0x1e3   :  { %275 = vpow2.f32 %v207_v0 }
 0x1e9   :  { %v276_v1 = vpop.eup %275 }
 0x1ea   :  { %v209_v2 = vsel %vm198_vm2, %v276_v1, 0.0 }
 0x1eb   :  { %v210_v3 = vrot.slane %v209_v2, 4 }
 0x1ed   :  { %v211_v4 = vadd.f32 %v210_v3, %v209_v2 }
 0x1ef   :  { %v212_v5 = vrot.slane %v211_v4, 2 }
 0x1f1   :  { %v213_v6 = vadd.f32 %v212_v5, %v211_v4 }
 0x1f3   :  { %v214_v7 = vrot.slane %v213_v6, 1 }
 0x1f5   :  { %v215_v8 = vadd.f32 %v214_v7, %v213_v6 }
 0x1f7   :  { %277 = vrcp.f32 %v215_v8 }
 0x1fd   :  { %v278_v9 = vpop.eup %277 }
 0x1fe   :  { %v217_v10 = vmul.f32 %v278_v9, %v276_v1 }
 0x200   :  { %218 = vst.msk [vmem:[%s381_s7] sm:$0xff] %vm198_vm2, %v217_v10 }

</bundles_post_ra>
